<compile_context>
chip_gen: v7x
topology: tpu7x:2x2x1
jax: 0.10.0
libtpu: 0.0.40
codegen_flags: <defaults>
</compile_context>

<pallas_src>
import jax
import jax.numpy as jnp
from jax.experimental import pallas as pl
from jax.experimental.pallas import tpu as pltpu

LANES = 128


# ------------------------------ host-side packing --------------------------------- #

def init_dbm(key, layers):
    """Per-RBM params, same distributions as the torch module."""
    params = []
    for (nv, nh) in layers:
        key, kb, kc, kw = jax.random.split(key, 4)
        params.append(dict(
            b=jax.random.normal(kb, (nv,), jnp.float32),
            c=jax.random.normal(kc, (nh,), jnp.float32),
            W=jax.random.normal(kw, (nv, nh), jnp.float32),
        ))
    return params


def _layer_geometry(params, nv0):
    dims = [nv0] + [p["W"].shape[1] for p in params]   # [v, h1, ..., hL]
    off, s = [], 0
    for d in dims:
        off.append(s)
        s += d
    return dims, off, s


def _pack_params(params, dims, off, b_pad):
    """One lane-dense f32 slab:
       rows [0,128)           M_he   (he phase: odd layers -> v + even hidden layers)
       rows [128,256)         M_ho   (ho phase: v + even hidden -> odd layers)
       rows [256,384)         M_quad (energy: layer_r -> layer_{r+1} via W_r)
       rows [384, 384+b_pad)  bias_he      (tiled over sublanes)
       next b_pad rows        bias_ho
       next b_pad rows        bias_energy
    """
    L = len(params)
    n_even, n_odd = (L + 1) // 2, L // 2
    W = [p["W"] for p in params]
    b = [p["b"] for p in params]
    c = [p["c"] for p in params]

    m_he = jnp.zeros((LANES, LANES), jnp.float32)
    m_ho = jnp.zeros((LANES, LANES), jnp.float32)
    m_q = jnp.zeros((LANES, LANES), jnp.float32)
    bias_he = jnp.zeros((LANES,), jnp.float32)
    bias_ho = jnp.zeros((LANES,), jnp.float32)
    bias_en = jnp.zeros((LANES,), jnp.float32)

    def put(m, row_layer, col_layer, blk):
        rs, cs = off[row_layer], off[col_layer]
        return m.at[rs:rs + dims[row_layer], cs:cs + dims[col_layer]].set(blk)

    def add(vec, layer, val):
        s = off[layer]
        return vec.at[s:s + dims[layer]].add(val)

    # --- he phase (DBM.he_given_ho) + the fused v|h1 Gibbs update ---------------- #
    m_he = put(m_he, 1, 0, W[0].T)               # v <- h1 @ W0.T  (v_given_h1)
    bias_he = add(bias_he, 0, b[0])
    for i, r in enumerate(range(1, L, 2)):       # odd RBMs
        m_he = put(m_he, r, r + 1, W[r])
        bias_he = add(bias_he, r + 1, c[r])
        if i < n_odd - 1:                        # torch guard (top-down term dropped at top)
            m_he = put(m_he, r + 2, r + 1, W[r + 1].T)
            bias_he = add(bias_he, r + 1, b[r + 1])

    # --- ho phase (DBM.ho_given_he) ----------------------------------------------- #
    for i, r in enumerate(range(0, L, 2)):       # even RBMs
        m_ho = put(m_ho, r, r + 1, W[r])
        bias_ho = add(bias_ho, r + 1, c[r])
        if i < n_even - 1:                       # torch guard
            m_ho = put(m_ho, r + 2, r + 1, W[r + 1].T)
            bias_ho = add(bias_ho, r + 1, b[r + 1])

    # --- energy:  sum_r [ b_r.v + c_r.h + ((v @ W_r) * h).sum ]  collapses to one
    #     bias row + one block matrix over the packed full state ------------------- #
    for r in range(L):
        m_q = put(m_q, r, r + 1, W[r])
        bias_en = add(bias_en, r, b[r])
        bias_en = add(bias_en, r + 1, c[r])

    tile = lambda vec: jnp.tile(vec[None, :], (b_pad, 1))
    return jnp.concatenate(
        [m_he, m_ho, m_q, tile(bias_he), tile(bias_ho), tile(bias_en)], axis=0)


def _pack_state(rows, dims, off, batch, b_pad):
    slab = jnp.zeros((b_pad, LANES), jnp.float32)
    for j, a in enumerate(rows):
        slab = slab.at[:batch, off[j]:off[j] + dims[j]].set(a)
    return slab


# ----------------------------------- kernel ---------------------------------------- #

def _build_dbm_kernel(L, n, k, batch, b_pad, dims, off):
    n_even, n_odd = (L + 1) // 2, L // 2
    mf_he_layers = [2 * i + 2 for i in range(n_odd)]     # even hidden layers
    gibbs_he_layers = [0] + mf_he_layers                 # + the visible layer
    ho_layers = [2 * i + 1 for i in range(n_even)]       # odd hidden layers

    r_he, r_ho, r_q, r_bias = 0, LANES, 2 * LANES, 3 * LANES

    def kernel(prm_ref, st_ref, u_ref, out_ref):
        lane = jax.lax.broadcasted_iota(jnp.int32, (b_pad, LANES), 1)
        row = jax.lax.broadcasted_iota(jnp.int32, (b_pad, LANES), 0)

        def lane_mask(layers):
            m = jnp.zeros((b_pad, LANES), jnp.bool_)
            for j in layers:
                s, d = off[j], dims[j]
                m = jnp.logical_or(m, jnp.logical_and(lane >= s, lane < s + d))
            return m

        mask_mf_he = lane_mask(mf_he_layers)     # mean-field he phase: even hidden only
        mask_g_he = lane_mask(gibbs_he_layers)   # Gibbs he phase: v + even hidden
        mask_ho = lane_mask(ho_layers)           # ho phase: odd layers
        row_valid = (row < batch).astype(jnp.float32)

        bias_he = prm_ref[r_bias:r_bias + b_pad, :]
        bias_ho = prm_ref[r_bias + b_pad:r_bias + 2 * b_pad, :]
        bias_en = prm_ref[r_bias + 2 * b_pad:r_bias + 3 * b_pad, :]

        def he_pre(x):
            return jnp.dot(x, prm_ref[r_he:r_he + LANES, :],
                           preferred_element_type=jnp.float32) + bias_he

        def ho_pre(x):
            return jnp.dot(x, prm_ref[r_ho:r_ho + LANES, :],
                           preferred_element_type=jnp.float32) + bias_ho

        def quad(x):
            return jnp.dot(x, prm_ref[r_q:r_q + LANES, :],
                           preferred_element_type=jnp.float32)

        # ---- mean field (DBM.mean_field); n small & static -> unrolled ---------- #
        mf = st_ref[0:b_pad, :]                  # [v | h1_pmf | ... | hL_pmf | 0pad]
        for _ in range(n):
            mf = jnp.where(mask_mf_he, jax.nn.sigmoid(he_pre(mf)), mf)
            mf = jnp.where(mask_ho, jax.nn.sigmoid(ho_pre(mf)), mf)

        # ---- Gibbs chain (DBM.gibbs_update); Bernoulli via packed host uniforms -- #
        g = st_ref[b_pad:2 * b_pad, :]           # [v_m | h1 | ... | hL | 0pad]
        for t in range(k):
            u = u_ref[t * b_pad:(t + 1) * b_pad, :]          # fresh draws this sweep
            s = (u < jax.nn.sigmoid(he_pre(g))).astype(jnp.float32)
            g = jnp.where(mask_g_he, s, g)                   # uses v/even lanes of u
            s = (u < jax.nn.sigmoid(ho_pre(g))).astype(jnp.float32)
            g = jnp.where(mask_ho, s, g)                     # uses odd lanes of u

        # ---- 2L RBM energies collapsed: 2 dots + elementwise + 2 reductions ------ #
        acc = (mf * bias_en + quad(mf) * mf) - (g * bias_en + quad(g) * g)
        acc = acc * row_valid                                # drop sublane padding
        col = jnp.sum(acc, axis=0, keepdims=True)            # (1, 128)  one sublane sum
        tot = jnp.sum(col, axis=1, keepdims=True)            # (1, 1)    one lane sum
        llh = tot * jnp.float32(-1.0 / batch)

        out_ref[0:b_pad, :] = g                              # [v_s | h1 | ... | hL]
        out_ref[b_pad:b_pad + 8, :] = jnp.broadcast_to(llh, (8, LANES))

    return kernel


# --------------------------------- DBM wrapper ------------------------------------- #

def dbm_forward(params, v, v_m, h_list, h_pmfs, n, k, key):
    """Fused DBM forward (torch DBM.forward semantics up to the Bernoulli RNG stream).
    `v_m` is packed for interface parity; as in the torch reference it is overwritten
    by the v|h1 sample before ever being read (k >= 1)."""
    assert n >= 1 and k >= 1, "reference semantics require n >= 1 and k >= 1"
    L = len(params)
    batch, nv0 = v.shape
    dims, off, total = _layer_geometry(params, nv0)
    assert total <= LANES, "packed DBM state must fit in one 128-lane row"
    # TODO(synk): states wider than 128 lanes would need multi-tile packing.
    b_pad = max(8, -(-batch // 8) * 8)

    prm = _pack_params(params, dims, off, b_pad)
    state = jnp.concatenate([
        _pack_state([v] + list(h_pmfs), dims, off, batch, b_pad),    # mean-field init
        _pack_state([v_m] + list(h_list), dims, off, batch, b_pad),  # Gibbs init
    ], axis=0)
    uniforms = jax.random.uniform(key, (k * b_pad, LANES), jnp.float32)

    kernel = _build_dbm_kernel(L, n, k, batch, b_pad, dims, off)
    out = pl.pallas_call(
        kernel,
        out_shape=jax.ShapeDtypeStruct((b_pad + 8, LANES), jnp.float32),
        grid=(1,),
        in_specs=[
            pl.BlockSpec(prm.shape, lambda i: (0, 0)),
            pl.BlockSpec(state.shape, lambda i: (0, 0)),
            pl.BlockSpec(uniforms.shape, lambda i: (0, 0)),
        ],
        out_specs=pl.BlockSpec((b_pad + 8, LANES), lambda i: (0, 0)),
        compiler_params=pltpu.CompilerParams(dimension_semantics=("arbitrary",)),
    )(prm, state, uniforms)

    llh = out[b_pad, 0]
    v_sample = out[:batch, off[0]:off[0] + dims[0]]
    h_samples = [out[:batch, off[j + 1]:off[j + 1] + dims[j + 1]] for j in range(L)]
    return llh, v_sample, h_samples


# ------------------------------------ main ----------------------------------------- #

if __name__ == "__main__":
    layers = [(16, 32), (32, 24), (24, 16)]   # DBM: v(16) - h1(32) - h2(24) - h3(16)
    batch = 4
    n_mf, k_gibbs = 2, 2

    root = jax.random.PRNGKey(0)
    kp, kv, kvm, kh, kpmf, ku = jax.random.split(root, 6)

    params = init_dbm(kp, layers)

    v = jax.random.bernoulli(kv, 0.5, (batch, layers[0][0])).astype(jnp.float32)
    v_m = jax.random.bernoulli(kvm, 0.5, (batch, layers[0][0])).astype(jnp.float32)

    hidden_dims = [nh for (_, nh) in layers]              # 32, 24, 16
    h_list = [jax.random.bernoulli(jax.random.fold_in(kh, j), 0.5,
                                   (batch, d)).astype(jnp.float32)
              for j, d in enumerate(hidden_dims)]
    h_pmfs = [jax.random.uniform(jax.random.fold_in(kpmf, j), (batch, d), jnp.float32)
              for j, d in enumerate(hidden_dims)]

    llh, v_sample, h_samples = dbm_forward(params, v, v_m, h_list, h_pmfs,
                                           n_mf, k_gibbs, key=ku)

    jax.block_until_ready(llh)
    jax.block_until_ready(v_sample)
    for h in h_samples:
        jax.block_until_ready(h)

    assert llh.shape == ()
    assert bool(jnp.isfinite(llh))
    assert v_sample.shape == (batch, layers[0][0])
    assert [h.shape for h in h_samples] == [(batch, d) for d in hidden_dims]
    assert bool(jnp.all((v_sample == 0.0) | (v_sample == 1.0)))
    for h in h_samples:
        assert bool(jnp.all((h == 0.0) | (h == 1.0)))

    print("KERNEL_OK")
</pallas_src>

<mosaic_0001>
module attributes {stable_mosaic.version = 11 : i64} {
  func.func @kernel(%arg0: i32, %arg1: memref<408x128xf32, #tpu.memory_space<vmem>>, %arg2: memref<16x128xf32, #tpu.memory_space<vmem>>, %arg3: memref<16x128xf32, #tpu.memory_space<vmem>>, %arg4: memref<16x128xf32, #tpu.memory_space<vmem>>) attributes {dimension_semantics = [#tpu.dimension_semantics<arbitrary>], iteration_bounds = array<i64: 1>, scalar_prefetch = 0 : i64, scratch_operands = 0 : i64, tpu.core_type = #tpu.core_type<tc>, window_params = [{pipeline_mode = #tpu.pipeline_mode<synchronous>, transform_indices = @transform_0, window_bounds = array<i64: 408, 128>}, {pipeline_mode = #tpu.pipeline_mode<synchronous>, transform_indices = @transform_1, window_bounds = array<i64: 16, 128>}, {pipeline_mode = #tpu.pipeline_mode<synchronous>, transform_indices = @transform_2, window_bounds = array<i64: 16, 128>}, {pipeline_mode = #tpu.pipeline_mode<synchronous>, transform_indices = @transform_3, window_bounds = array<i64: 16, 128>}]} {
    %0 = tpu.iota {dimensions = array<i32: 1>} : vector<8x128xi32>
    %1 = tpu.iota {dimensions = array<i32: 0>} : vector<8x128xi32>
    %false = arith.constant false
    %2 = vector.broadcast %false : i1 to vector<8x128xi1>
    %c48_i32 = arith.constant 48 : i32
    %3 = vector.broadcast %c48_i32 : i32 to vector<8x128xi32>
    %4 = arith.cmpi sge, %0, %3 : vector<8x128xi32>
    %c72_i32 = arith.constant 72 : i32
    %5 = vector.broadcast %c72_i32 : i32 to vector<8x128xi32>
    %6 = arith.cmpi slt, %0, %5 : vector<8x128xi32>
    %7 = arith.andi %4, %6 : vector<8x128xi1>
    %8 = arith.ori %2, %7 : vector<8x128xi1>
    %false_0 = arith.constant false
    %9 = vector.broadcast %false_0 : i1 to vector<8x128xi1>
    %c0_i32 = arith.constant 0 : i32
    %10 = vector.broadcast %c0_i32 : i32 to vector<8x128xi32>
    %11 = arith.cmpi sge, %0, %10 : vector<8x128xi32>
    %c16_i32 = arith.constant 16 : i32
    %12 = vector.broadcast %c16_i32 : i32 to vector<8x128xi32>
    %13 = arith.cmpi slt, %0, %12 : vector<8x128xi32>
    %14 = arith.andi %11, %13 : vector<8x128xi1>
    %15 = arith.ori %9, %14 : vector<8x128xi1>
    %c48_i32_1 = arith.constant 48 : i32
    %16 = vector.broadcast %c48_i32_1 : i32 to vector<8x128xi32>
    %17 = arith.cmpi sge, %0, %16 : vector<8x128xi32>
    %c72_i32_2 = arith.constant 72 : i32
    %18 = vector.broadcast %c72_i32_2 : i32 to vector<8x128xi32>
    %19 = arith.cmpi slt, %0, %18 : vector<8x128xi32>
    %20 = arith.andi %17, %19 : vector<8x128xi1>
    %21 = arith.ori %15, %20 : vector<8x128xi1>
    %false_3 = arith.constant false
    %22 = vector.broadcast %false_3 : i1 to vector<8x128xi1>
    %c16_i32_4 = arith.constant 16 : i32
    %23 = vector.broadcast %c16_i32_4 : i32 to vector<8x128xi32>
    %24 = arith.cmpi sge, %0, %23 : vector<8x128xi32>
    %c48_i32_5 = arith.constant 48 : i32
    %25 = vector.broadcast %c48_i32_5 : i32 to vector<8x128xi32>
    %26 = arith.cmpi slt, %0, %25 : vector<8x128xi32>
    %27 = arith.andi %24, %26 : vector<8x128xi1>
    %28 = arith.ori %22, %27 : vector<8x128xi1>
    %c72_i32_6 = arith.constant 72 : i32
    %29 = vector.broadcast %c72_i32_6 : i32 to vector<8x128xi32>
    %30 = arith.cmpi sge, %0, %29 : vector<8x128xi32>
    %c88_i32 = arith.constant 88 : i32
    %31 = vector.broadcast %c88_i32 : i32 to vector<8x128xi32>
    %32 = arith.cmpi slt, %0, %31 : vector<8x128xi32>
    %33 = arith.andi %30, %32 : vector<8x128xi1>
    %34 = arith.ori %28, %33 : vector<8x128xi1>
    %c4_i32 = arith.constant 4 : i32
    %35 = vector.broadcast %c4_i32 : i32 to vector<8x128xi32>
    %36 = arith.cmpi slt, %1, %35 : vector<8x128xi32>
    %37 = arith.extui %36 : vector<8x128xi1> to vector<8x128xi32>
    %38 = arith.sitofp %37 : vector<8x128xi32> to vector<8x128xf32>
    %c384 = arith.constant 384 : index
    %c0 = arith.constant 0 : index
    %39 = vector.load %arg1[%c384, %c0] : memref<408x128xf32, #tpu.memory_space<vmem>>, vector<8x128xf32>
    %c392 = arith.constant 392 : index
    %c0_7 = arith.constant 0 : index
    %40 = vector.load %arg1[%c392, %c0_7] : memref<408x128xf32, #tpu.memory_space<vmem>>, vector<8x128xf32>
    %c400 = arith.constant 400 : index
    %c0_8 = arith.constant 0 : index
    %41 = vector.load %arg1[%c400, %c0_8] : memref<408x128xf32, #tpu.memory_space<vmem>>, vector<8x128xf32>
    %c0_9 = arith.constant 0 : index
    %c0_10 = arith.constant 0 : index
    %42 = vector.load %arg2[%c0_9, %c0_10] : memref<16x128xf32, #tpu.memory_space<vmem>>, vector<8x128xf32>
    %c0_11 = arith.constant 0 : index
    %c0_12 = arith.constant 0 : index
    %43 = vector.load %arg1[%c0_11, %c0_12] : memref<408x128xf32, #tpu.memory_space<vmem>>, vector<128x128xf32>
    %cst = arith.constant dense<0.000000e+00> : vector<8x128xf32>
    %44 = tpu.matmul %42, %43, %cst {dimension_numbers = #tpu.dot_dimension_numbers<[1], [0], [0], [1], [0, 0, 1, 1], [], []>} : vector<8x128xf32>, vector<128x128xf32>, vector<8x128xf32> -> vector<8x128xf32>
    %45 = arith.addf %44, %39 : vector<8x128xf32>
    %46 = arith.negf %45 : vector<8x128xf32>
    %47 = math.exp %46 : vector<8x128xf32>
    %cst_13 = arith.constant 1.000000e+00 : f32
    %48 = vector.broadcast %cst_13 : f32 to vector<8x128xf32>
    %49 = arith.addf %48, %47 : vector<8x128xf32>
    %50 = arith.divf %48, %49 : vector<8x128xf32>
    %51 = arith.select %8, %50, %42 : vector<8x128xi1>, vector<8x128xf32>
    %c128 = arith.constant 128 : index
    %c0_14 = arith.constant 0 : index
    %52 = vector.load %arg1[%c128, %c0_14] : memref<408x128xf32, #tpu.memory_space<vmem>>, vector<128x128xf32>
    %cst_15 = arith.constant dense<0.000000e+00> : vector<8x128xf32>
    %53 = tpu.matmul %51, %52, %cst_15 {dimension_numbers = #tpu.dot_dimension_numbers<[1], [0], [0], [1], [0, 0, 1, 1], [], []>} : vector<8x128xf32>, vector<128x128xf32>, vector<8x128xf32> -> vector<8x128xf32>
    %54 = arith.addf %53, %40 : vector<8x128xf32>
    %55 = arith.negf %54 : vector<8x128xf32>
    %56 = math.exp %55 : vector<8x128xf32>
    %cst_16 = arith.constant 1.000000e+00 : f32
    %57 = vector.broadcast %cst_16 : f32 to vector<8x128xf32>
    %58 = arith.addf %57, %56 : vector<8x128xf32>
    %59 = arith.divf %57, %58 : vector<8x128xf32>
    %60 = arith.select %34, %59, %51 : vector<8x128xi1>, vector<8x128xf32>
    %c0_17 = arith.constant 0 : index
    %c0_18 = arith.constant 0 : index
    %61 = vector.load %arg1[%c0_17, %c0_18] : memref<408x128xf32, #tpu.memory_space<vmem>>, vector<128x128xf32>
    %cst_19 = arith.constant dense<0.000000e+00> : vector<8x128xf32>
    %62 = tpu.matmul %60, %61, %cst_19 {dimension_numbers = #tpu.dot_dimension_numbers<[1], [0], [0], [1], [0, 0, 1, 1], [], []>} : vector<8x128xf32>, vector<128x128xf32>, vector<8x128xf32> -> vector<8x128xf32>
    %63 = arith.addf %62, %39 : vector<8x128xf32>
    %64 = arith.negf %63 : vector<8x128xf32>
    %65 = math.exp %64 : vector<8x128xf32>
    %cst_20 = arith.constant 1.000000e+00 : f32
    %66 = vector.broadcast %cst_20 : f32 to vector<8x128xf32>
    %67 = arith.addf %66, %65 : vector<8x128xf32>
    %68 = arith.divf %66, %67 : vector<8x128xf32>
    %69 = arith.select %8, %68, %60 : vector<8x128xi1>, vector<8x128xf32>
    %c128_21 = arith.constant 128 : index
    %c0_22 = arith.constant 0 : index
    %70 = vector.load %arg1[%c128_21, %c0_22] : memref<408x128xf32, #tpu.memory_space<vmem>>, vector<128x128xf32>
    %cst_23 = arith.constant dense<0.000000e+00> : vector<8x128xf32>
    %71 = tpu.matmul %69, %70, %cst_23 {dimension_numbers = #tpu.dot_dimension_numbers<[1], [0], [0], [1], [0, 0, 1, 1], [], []>} : vector<8x128xf32>, vector<128x128xf32>, vector<8x128xf32> -> vector<8x128xf32>
    %72 = arith.addf %71, %40 : vector<8x128xf32>
    %73 = arith.negf %72 : vector<8x128xf32>
    %74 = math.exp %73 : vector<8x128xf32>
    %cst_24 = arith.constant 1.000000e+00 : f32
    %75 = vector.broadcast %cst_24 : f32 to vector<8x128xf32>
    %76 = arith.addf %75, %74 : vector<8x128xf32>
    %77 = arith.divf %75, %76 : vector<8x128xf32>
    %78 = arith.select %34, %77, %69 : vector<8x128xi1>, vector<8x128xf32>
    %c8 = arith.constant 8 : index
    %c0_25 = arith.constant 0 : index
    %79 = vector.load %arg2[%c8, %c0_25] : memref<16x128xf32, #tpu.memory_space<vmem>>, vector<8x128xf32>
    %c0_26 = arith.constant 0 : index
    %c0_27 = arith.constant 0 : index
    %80 = vector.load %arg3[%c0_26, %c0_27] : memref<16x128xf32, #tpu.memory_space<vmem>>, vector<8x128xf32>
    %c0_28 = arith.constant 0 : index
    %c0_29 = arith.constant 0 : index
    %81 = vector.load %arg1[%c0_28, %c0_29] : memref<408x128xf32, #tpu.memory_space<vmem>>, vector<128x128xf32>
    %cst_30 = arith.constant dense<0.000000e+00> : vector<8x128xf32>
    %82 = tpu.matmul %79, %81, %cst_30 {dimension_numbers = #tpu.dot_dimension_numbers<[1], [0], [0], [1], [0, 0, 1, 1], [], []>} : vector<8x128xf32>, vector<128x128xf32>, vector<8x128xf32> -> vector<8x128xf32>
    %83 = arith.addf %82, %39 : vector<8x128xf32>
    %84 = arith.negf %83 : vector<8x128xf32>
    %85 = math.exp %84 : vector<8x128xf32>
    %cst_31 = arith.constant 1.000000e+00 : f32
    %86 = vector.broadcast %cst_31 : f32 to vector<8x128xf32>
    %87 = arith.addf %86, %85 : vector<8x128xf32>
    %88 = arith.divf %86, %87 : vector<8x128xf32>
    %89 = arith.cmpf olt, %80, %88 : vector<8x128xf32>
    %90 = arith.extui %89 : vector<8x128xi1> to vector<8x128xi32>
    %91 = arith.sitofp %90 : vector<8x128xi32> to vector<8x128xf32>
    %92 = arith.select %21, %91, %79 : vector<8x128xi1>, vector<8x128xf32>
    %c128_32 = arith.constant 128 : index
    %c0_33 = arith.constant 0 : index
    %93 = vector.load %arg1[%c128_32, %c0_33] : memref<408x128xf32, #tpu.memory_space<vmem>>, vector<128x128xf32>
    %cst_34 = arith.constant dense<0.000000e+00> : vector<8x128xf32>
    %94 = tpu.matmul %92, %93, %cst_34 {dimension_numbers = #tpu.dot_dimension_numbers<[1], [0], [0], [1], [0, 0, 1, 1], [], []>} : vector<8x128xf32>, vector<128x128xf32>, vector<8x128xf32> -> vector<8x128xf32>
    %95 = arith.addf %94, %40 : vector<8x128xf32>
    %96 = arith.negf %95 : vector<8x128xf32>
    %97 = math.exp %96 : vector<8x128xf32>
    %cst_35 = arith.constant 1.000000e+00 : f32
    %98 = vector.broadcast %cst_35 : f32 to vector<8x128xf32>
    %99 = arith.addf %98, %97 : vector<8x128xf32>
    %100 = arith.divf %98, %99 : vector<8x128xf32>
    %101 = arith.cmpf olt, %80, %100 : vector<8x128xf32>
    %102 = arith.extui %101 : vector<8x128xi1> to vector<8x128xi32>
    %103 = arith.sitofp %102 : vector<8x128xi32> to vector<8x128xf32>
    %104 = arith.select %34, %103, %92 : vector<8x128xi1>, vector<8x128xf32>
    %c8_36 = arith.constant 8 : index
    %c0_37 = arith.constant 0 : index
    %105 = vector.load %arg3[%c8_36, %c0_37] : memref<16x128xf32, #tpu.memory_space<vmem>>, vector<8x128xf32>
    %c0_38 = arith.constant 0 : index
    %c0_39 = arith.constant 0 : index
    %106 = vector.load %arg1[%c0_38, %c0_39] : memref<408x128xf32, #tpu.memory_space<vmem>>, vector<128x128xf32>
    %cst_40 = arith.constant dense<0.000000e+00> : vector<8x128xf32>
    %107 = tpu.matmul %104, %106, %cst_40 {dimension_numbers = #tpu.dot_dimension_numbers<[1], [0], [0], [1], [0, 0, 1, 1], [], []>} : vector<8x128xf32>, vector<128x128xf32>, vector<8x128xf32> -> vector<8x128xf32>
    %108 = arith.addf %107, %39 : vector<8x128xf32>
    %109 = arith.negf %108 : vector<8x128xf32>
    %110 = math.exp %109 : vector<8x128xf32>
    %cst_41 = arith.constant 1.000000e+00 : f32
    %111 = vector.broadcast %cst_41 : f32 to vector<8x128xf32>
    %112 = arith.addf %111, %110 : vector<8x128xf32>
    %113 = arith.divf %111, %112 : vector<8x128xf32>
    %114 = arith.cmpf olt, %105, %113 : vector<8x128xf32>
    %115 = arith.extui %114 : vector<8x128xi1> to vector<8x128xi32>
    %116 = arith.sitofp %115 : vector<8x128xi32> to vector<8x128xf32>
    %117 = arith.select %21, %116, %104 : vector<8x128xi1>, vector<8x128xf32>
    %c128_42 = arith.constant 128 : index
    %c0_43 = arith.constant 0 : index
    %118 = vector.load %arg1[%c128_42, %c0_43] : memref<408x128xf32, #tpu.memory_space<vmem>>, vector<128x128xf32>
    %cst_44 = arith.constant dense<0.000000e+00> : vector<8x128xf32>
    %119 = tpu.matmul %117, %118, %cst_44 {dimension_numbers = #tpu.dot_dimension_numbers<[1], [0], [0], [1], [0, 0, 1, 1], [], []>} : vector<8x128xf32>, vector<128x128xf32>, vector<8x128xf32> -> vector<8x128xf32>
    %120 = arith.addf %119, %40 : vector<8x128xf32>
    %121 = arith.negf %120 : vector<8x128xf32>
    %122 = math.exp %121 : vector<8x128xf32>
    %cst_45 = arith.constant 1.000000e+00 : f32
    %123 = vector.broadcast %cst_45 : f32 to vector<8x128xf32>
    %124 = arith.addf %123, %122 : vector<8x128xf32>
    %125 = arith.divf %123, %124 : vector<8x128xf32>
    %126 = arith.cmpf olt, %105, %125 : vector<8x128xf32>
    %127 = arith.extui %126 : vector<8x128xi1> to vector<8x128xi32>
    %128 = arith.sitofp %127 : vector<8x128xi32> to vector<8x128xf32>
    %129 = arith.select %34, %128, %117 : vector<8x128xi1>, vector<8x128xf32>
    %130 = arith.mulf %78, %41 : vector<8x128xf32>
    %c256 = arith.constant 256 : index
    %c0_46 = arith.constant 0 : index
    %131 = vector.load %arg1[%c256, %c0_46] : memref<408x128xf32, #tpu.memory_space<vmem>>, vector<128x128xf32>
    %cst_47 = arith.constant dense<0.000000e+00> : vector<8x128xf32>
    %132 = tpu.matmul %78, %131, %cst_47 {dimension_numbers = #tpu.dot_dimension_numbers<[1], [0], [0], [1], [0, 0, 1, 1], [], []>} : vector<8x128xf32>, vector<128x128xf32>, vector<8x128xf32> -> vector<8x128xf32>
    %133 = arith.mulf %132, %78 : vector<8x128xf32>
    %134 = arith.addf %130, %133 : vector<8x128xf32>
    %135 = arith.mulf %129, %41 : vector<8x128xf32>
    %c256_48 = arith.constant 256 : index
    %c0_49 = arith.constant 0 : index
    %136 = vector.load %arg1[%c256_48, %c0_49] : memref<408x128xf32, #tpu.memory_space<vmem>>, vector<128x128xf32>
    %cst_50 = arith.constant dense<0.000000e+00> : vector<8x128xf32>
    %137 = tpu.matmul %129, %136, %cst_50 {dimension_numbers = #tpu.dot_dimension_numbers<[1], [0], [0], [1], [0, 0, 1, 1], [], []>} : vector<8x128xf32>, vector<128x128xf32>, vector<8x128xf32> -> vector<8x128xf32>
    %138 = arith.mulf %137, %129 : vector<8x128xf32>
    %139 = arith.addf %135, %138 : vector<8x128xf32>
    %140 = arith.subf %134, %139 : vector<8x128xf32>
    %141 = arith.mulf %140, %38 : vector<8x128xf32>
    %cst_51 = arith.constant dense<0.000000e+00> : vector<128xf32>
    %142 = vector.multi_reduction <add>, %141, %cst_51 [0] : vector<8x128xf32> to vector<128xf32>
    %143 = vector.shape_cast %142 : vector<128xf32> to vector<1x128xf32>
    %cst_52 = arith.constant dense<0.000000e+00> : vector<1xf32>
    %144 = vector.multi_reduction <add>, %143, %cst_52 [1] : vector<1x128xf32> to vector<1xf32>
    %145 = vector.shape_cast %144 : vector<1xf32> to vector<1x1xf32>
    %cst_53 = arith.constant -2.500000e-01 : f32
    %146 = vector.broadcast %cst_53 : f32 to vector<1x1xf32>
    %147 = arith.mulf %145, %146 : vector<1x1xf32>
    %c0_54 = arith.constant 0 : index
    %c0_55 = arith.constant 0 : index
    %148 = vector.load %arg4[%c0_54, %c0_55] : memref<16x128xf32, #tpu.memory_space<vmem>>, vector<8x128xf32>
    tpu.vector_store %arg4[%c0_54, %c0_55], %129 {strides = array<i32>} : memref<16x128xf32, #tpu.memory_space<vmem>>, vector<8x128xf32>,
    %149 = vector.shape_cast %147 : vector<1x1xf32> to vector<1x1xf32>
    %150 = vector.broadcast %149 : vector<1x1xf32> to vector<8x128xf32>
    %c8_56 = arith.constant 8 : index
    %c0_57 = arith.constant 0 : index
    %151 = vector.load %arg4[%c8_56, %c0_57] : memref<16x128xf32, #tpu.memory_space<vmem>>, vector<8x128xf32>
    tpu.vector_store %arg4[%c8_56, %c0_57], %150 {strides = array<i32>} : memref<16x128xf32, #tpu.memory_space<vmem>>, vector<8x128xf32>,
    return
  }
  func.func @transform_0(%arg0: i32) -> (i32, i32) {
    %c0_i32 = arith.constant 0 : i32
    %c0_i32_0 = arith.constant 0 : i32
    %c0_i32_1 = arith.constant 0 : i32
    return %c0_i32, %c0_i32_0 : i32, i32
  }
  func.func @transform_1(%arg0: i32) -> (i32, i32) {
    %c0_i32 = arith.constant 0 : i32
    %c0_i32_0 = arith.constant 0 : i32
    %c0_i32_1 = arith.constant 0 : i32
    return %c0_i32, %c0_i32_0 : i32, i32
  }
  func.func @transform_2(%arg0: i32) -> (i32, i32) {
    %c0_i32 = arith.constant 0 : i32
    %c0_i32_0 = arith.constant 0 : i32
    %c0_i32_1 = arith.constant 0 : i32
    return %c0_i32, %c0_i32_0 : i32, i32
  }
  func.func @transform_3(%arg0: i32) -> (i32, i32) {
    %c0_i32 = arith.constant 0 : i32
    %c0_i32_0 = arith.constant 0 : i32
    %c0_i32_1 = arith.constant 0 : i32
    return %c0_i32, %c0_i32_0 : i32, i32
  }
}

</mosaic_0001>

<bundles_post_ra>
// kernel: tpu_custom_call.1
= control target key start
LH: loop header
LB: loop body
LE: loop exit
PB: predicated region body
PF: predicated region fallthrough
CT: control target
= control target key end

     0   :  { %8 = vsyncpa [#allocation3], 0  ;;  %s2211_s0 = inlined_call_operand.hbm [shape: f32[408,128], index: 0, kind: input, shape index: {}]   ;;  %s2212_s1 = inlined_call_operand.hbm [shape: f32[16,128], index: 1, kind: input, shape index: {}]   ;;  %s2213_s2 = inlined_call_operand.hbm [shape: f32[16,128], index: 2, kind: input, shape index: {}]   ;;  %s2214_s3 = inlined_call_operand.hbm [shape: f32[16,128], index: 3, kind: output, shape index: {}]  }
   0x1   :  { %9 = vsyncpa [#allocation6], 0 }
   0x2   :  { %10 = vsyncpa [#allocation4], 0  ;;  %s1845_s12 = smov [#allocation5]   ;;  %s1846_s14 = smov [#allocation2]  }
   0x3   :  { %s28_s13 = sshll.u32 %s1845_s12, 4  ;;  %s16_s15 = sshll.u32 %s1846_s14, 4  ;;  %s29_s13 = int_to_ptr.vmem [resolvable:$true] %s28_s13  ;;  %s1874_s15 = int_to_ptr.vmem [resolvable:$true] %s16_s15 }
   0x4   :  { %s1751_s18 = scalar_lea.hbm %s2212_s1, 256 }
   0x5   :  { %p1752_p0 = scmp.ne.s32.totalorder %s2212_s1, %s1751_s18  ;;  %p1755_p1 = scmp.lt.u32.totalorder %s1751_s18, %s2212_s1 }
   0x7   :  { %p1757_p2 = pnand %p1755_p1, %p1752_p0 }
   0x9   :  { %1760 = shalt.err (!%p1757_p2)
}
   0xa   :  { %s1761_s23 = scalar_lea.vmem %s29_s13, 256  ;;  %p1766_p4 = scmp.lt.s32.totalorder %s29_s13, %s29_s13 }
   0xb   :  { %p1762_p3 = scmp.ne.s32.totalorder %s29_s13, %s1761_s23  ;;  %p1767_p5 = scmp.lt.s32.totalorder %s1761_s23, %s1761_s23 }
   0xd   :  { %p1768_p6 = por %p1767_p5, %p1766_p4 }
   0xf   :  { %p1769_p7 = pnand %p1768_p6, %p1762_p3 }
  0x11   :  { %1772 = shalt.err (!%p1769_p7)
}
  0x12   :  { %s1847_s24 = smov 128   ;;  %s1848_s25 = smov 8  }
  0x13   :  { %34 = dma.hbm_to_vmem [thread:$0]  %s2212_s1, 256, %s29_s13, [#allocation6], %s1847_s24, %s1847_s24, %s1848_s25  }
  0x14   :  { %s1773_s30 = scalar_lea.hbm %s2211_s0, 6528 }
  0x15   :  { %p1774_p8 = scmp.ne.s32.totalorder %s2211_s0, %s1773_s30  ;;  %p1777_p9 = scmp.lt.u32.totalorder %s1773_s30, %s2211_s0 }
  0x17   :  { %p1779_p10 = pnand %p1777_p9, %p1774_p8 }
  0x19   :  { %1782 = shalt.err (!%p1779_p10)
}
  0x1a   :  { %s1783_s8 = scalar_lea.vmem %s1874_s15, 6528  ;;  %p1788_p12 = scmp.lt.s32.totalorder %s1874_s15, %s1874_s15 }
  0x1b   :  { %p1784_p11 = scmp.ne.s32.totalorder %s1874_s15, %s1783_s8  ;;  %p1789_p13 = scmp.lt.s32.totalorder %s1783_s8, %s1783_s8 }
  0x1d   :  { %p1790_p0 = por %p1789_p13, %p1788_p12 }
  0x1f   :  { %p1791_p1 = pnand %p1790_p0, %p1784_p11 }
  0x21   :  { %1794 = shalt.err (!%p1791_p1)
}
  0x22   :  { %22 = dma.hbm_to_vmem [thread:$0]  %s2211_s0, 6528, %s1874_s15, [#allocation3], %s1847_s24, %s1847_s24, %s1848_s25  }
  0x23   :  { %s1849_s10 = smov [#allocation7]   ;;  %s1795_s14 = scalar_lea.hbm %s2213_s2, 256 }
  0x24   :  { %s40_s11 = sshll.u32 %s1849_s10, 4  ;;  %p1796_p2 = scmp.ne.s32.totalorder %s2213_s2, %s1795_s14  ;;  %s41_s11 = int_to_ptr.vmem [resolvable:$true] %s40_s11 }
  0x25   :  { %p1799_p3 = scmp.lt.u32.totalorder %s1795_s14, %s2213_s2 }
  0x27   :  { %p1801_p4 = pnand %p1799_p3, %p1796_p2 }
  0x29   :  { %1804 = shalt.err (!%p1801_p4)
}
  0x2a   :  { %s1805_s20 = scalar_lea.vmem %s41_s11, 256  ;;  %p1810_p6 = scmp.lt.s32.totalorder %s41_s11, %s41_s11 }
  0x2b   :  { %p1806_p5 = scmp.ne.s32.totalorder %s41_s11, %s1805_s20  ;;  %p1811_p7 = scmp.lt.s32.totalorder %s1805_s20, %s1805_s20 }
  0x2d   :  { %p1812_p8 = por %p1811_p7, %p1810_p6 }
  0x2f   :  { %p1813_p9 = pnand %p1812_p8, %p1806_p5 }
  0x31   :  { %1816 = shalt.err (!%p1813_p9)
}
  0x32   :  { %46 = dma.hbm_to_vmem [thread:$0]  %s2213_s2, 256, %s41_s11, [#allocation6], %s1847_s24, %s1847_s24, %s1848_s25  }
  0x33   :  { %1839 = dma.done.wait [#allocation3], 6528  }
  0x34   :  { %1840 = vsyncadd [#allocation3], 4294960768 }
  0x35   :  { %1841 = dma.done.wait [#allocation6], 512  }
  0x36   :  { %1842 = vsyncadd [#allocation6], 4294966784  ;;  %v1850_v0 = vmov 0.0|0.0   ;;  %vm1851_vm0 = vmmov 0   ;;  %v1852_v1 = vmov 0.0   ;;  %v81_v2 = vld [vmem:[#allocation2] sm:$0xff]  ;;  %v56_v57 = vlaneseq }
  0x37   :  { %1470 = vmatprep.subr.bf16.mxu0 %v1850_v0  ;;  %1152 = vmatprep.mubr.msk.f32.mxu0 %vm1851_vm0, %v1852_v1  ;;  %v82_v3 = vld [vmem:[#allocation2 + $0x8] sm:$0xff]  ;;  %v83_v4 = vld [vmem:[#allocation2 + $0x10] sm:$0xff]  ;;  %v84_v6 = vld [vmem:[#allocation2 + $0x18] sm:$0xff]  ;;  %s1853_s2 = smov [#allocation8]  }
  0x38   :  { %1494 = vmatprep.subr.bf16.mxu1 %v1850_v0  ;;  %1187 = vmatprep.mubr.msk.f32.mxu1 %vm1851_vm0, %v1852_v1  ;;  %v1932_v5 = vpack.c.bf16 %v82_v3, %v81_v2  ;;  %v1935_v7 = vpack.c.bf16 %v84_v6, %v83_v4  ;;  %v85_v8 = vld [vmem:[#allocation2 + $0x20] sm:$0xff]  ;;  %v86_v9 = vld [vmem:[#allocation2 + $0x28] sm:$0xff]  ;;  %v87_v14 = vld [vmem:[#allocation2 + $0x30] sm:$0xff]  ;;  %v2021_v59 = vand.u32 127, %v56_v57  ;;  %s924_s21 = sshll.u32 %s1853_s2, 4  ;;  %s925_s21 = int_to_ptr.vmem [resolvable:$true] %s924_s21 }
  0x39   :  { %v174_v10 = vld [vmem:[#allocation2 + $0x80] sm:$0xff]  ;;  %v175_v11 = vld [vmem:[#allocation2 + $0x88] sm:$0xff]  ;;  %v1939_v12 = vpack.c.bf16 %v86_v9, %v85_v8  ;;  %v88_v15 = vld [vmem:[#allocation2 + $0x38] sm:$0xff]  ;;  %s1817_s22 = scalar_lea.vmem %s925_s21, 256  ;;  %p1822_p11 = scmp.lt.s32.totalorder %s925_s21, %s925_s21 }
  0x3a   :  { %1472 = vmatpush3.bf16.msra.mxu0 %v1932_v5  ;;  %v1941_v13 = vpack.c.bf16 %v175_v11, %v174_v10  ;;  %v1947_v16 = vpack.c.bf16 %v88_v15, %v87_v14  ;;  %v89_v17 = vld [vmem:[#allocation2 + $0x40] sm:$0xff]  ;;  %v90_v18 = vld [vmem:[#allocation2 + $0x48] sm:$0xff]  ;;  %v91_v20 = vld [vmem:[#allocation2 + $0x50] sm:$0xff]  ;;  %vm60_vm1 = vcmp.ge.s32.totalorder %v2021_v59, 48  ;;  %vm61_vm2 = vcmp.lt.s32.totalorder %v2021_v59, 72  ;;  %p1818_p10 = scmp.ne.s32.totalorder %s925_s21, %s1817_s22  ;;  %p1823_p12 = scmp.lt.s32.totalorder %s1817_s22, %s1817_s22 }
  0x3b   :  { %1473 = vmatprep.subr.bf16.mxu0 %v1850_v0  ;;  %v1951_v19 = vpack.c.bf16 %v90_v18, %v89_v17  ;;  %v92_v21 = vld [vmem:[#allocation2 + $0x58] sm:$0xff]  ;;  %v93_v23 = vld [vmem:[#allocation2 + $0x60] sm:$0xff]  ;;  %v94_v24 = vld [vmem:[#allocation2 + $0x68] sm:$0xff]  ;;  %vm67_vm4 = vcmp.ge.s32.totalorder %v2021_v59, 16  ;;  %vm68_vm5 = vcmp.lt.s32.totalorder %v2021_v59, 48  ;;  %vm70_vm6 = vcmp.ge.s32.totalorder %v2021_v59, 72 }
  0x3c   :  { %1496 = vmatpush3.bf16.msra.mxu1 %v1941_v13  ;;  %v1955_v22 = vpack.c.bf16 %v92_v21, %v91_v20  ;;  %v1959_v25 = vpack.c.bf16 %v94_v24, %v93_v23  ;;  %v95_v26 = vld [vmem:[#allocation2 + $0x70] sm:$0xff]  ;;  %v96_v27 = vld [vmem:[#allocation2 + $0x78] sm:$0xff]  ;;  %v178_v33 = vld [vmem:[#allocation2 + $0xa0] sm:$0xff]  ;;  %vm71_vm7 = vcmp.lt.s32.totalorder %v2021_v59, 88  ;;  %vm64_vm11 = vcmp.lt.s32.totalorder %v2021_v59, 16  ;;  %p1824_p13 = por %p1823_p12, %p1822_p11 }
  0x3d   :  { %1497 = vmatprep.subr.bf16.mxu1 %v1850_v0  ;;  %v1963_v28 = vpack.c.bf16 %v96_v27, %v95_v26  ;;  %v1967_v29 = vld [vmem:[#allocation5] sm:$0xff]  ;;  %v176_v30 = vld [vmem:[#allocation2 + $0x90] sm:$0xff]  ;;  %v179_v34 = vld [vmem:[#allocation2 + $0xa8] sm:$0xff] }
  0x3e   :  { %1475 = vmatpush3.bf16.msra.mxu0 %v1935_v7  ;;  %v177_v31 = vld [vmem:[#allocation2 + $0x98] sm:$0xff]  ;;  %v1993_v35 = vpack.c.bf16 %v179_v34, %v178_v33  ;;  %v180_v36 = vld [vmem:[#allocation2 + $0xb0] sm:$0xff]  ;;  %v182_v39 = vld [vmem:[#allocation2 + $0xc0] sm:$0xff]  ;;  %p1825_p0 = pnand %p1824_p13, %p1818_p10 }
  0x3f   :  { %1476 = vmatprep.subr.bf16.mxu0 %v1850_v0  ;;  %v1989_v32 = vpack.c.bf16 %v177_v31, %v176_v30  ;;  %v181_v37 = vld [vmem:[#allocation2 + $0xb8] sm:$0xff]  ;;  %v183_v40 = vld [vmem:[#allocation2 + $0xc8] sm:$0xff]  ;;  %v184_v42 = vld [vmem:[#allocation2 + $0xd0] sm:$0xff] }
  0x40   :  { %v1997_v38 = vpack.c.bf16 %v181_v37, %v180_v36  ;;  %v2001_v41 = vpack.c.bf16 %v183_v40, %v182_v39  ;;  %v185_v43 = vld [vmem:[#allocation2 + $0xd8] sm:$0xff]  ;;  %v186_v45 = vld [vmem:[#allocation2 + $0xe0] sm:$0xff]  ;;  %v187_v46 = vld [vmem:[#allocation2 + $0xe8] sm:$0xff] }
  0x41   :  { %1499 = vmatpush3.bf16.msra.mxu1 %v1989_v32  ;;  %v2005_v44 = vpack.c.bf16 %v185_v43, %v184_v42  ;;  %v2008_v47 = vpack.c.bf16 %v187_v46, %v186_v45  ;;  %v188_v48 = vld [vmem:[#allocation2 + $0xf0] sm:$0xff]  ;;  %v189_v49 = vld [vmem:[#allocation2 + $0xf8] sm:$0xff]  ;;  %v2017_v51 = vld [vmem:[#allocation2 + $0x180] sm:$0xff] }
  0x42   :  { %1478 = vmatpush3.bf16.msra.mxu0 %v1939_v12  ;;  %1500 = vmatprep.subr.bf16.mxu1 %v1850_v0  ;;  %v2012_v50 = vpack.c.bf16 %v189_v49, %v188_v48  ;;  %vm2025_vm3 = vmand %vm60_vm1, %vm61_vm2  ;;  %v2050_v63 = vld [vmem:[#allocation2 + $0x188] sm:$0xff]  ;;  %v2080_v15 = vld [vmem:[#allocation5 + $0x8] sm:$0xff] }
  0x43   :  { %1479 = vmatprep.subr.bf16.mxu0 %v1850_v0  ;;  %vm69_vm8 = vmand %vm67_vm4, %vm68_vm5  ;;  %v422_v27 = vld [vmem:[#allocation7] sm:$0xff]  ;;  %v745_v40 = vld [vmem:[#allocation2 + $0x100] sm:$0xff] }
  0x44   :  { %vm72_vm9 = vmand %vm70_vm6, %vm71_vm7  ;;  %v747_v46 = vld [vmem:[#allocation2 + $0x110] sm:$0xff]  ;;  %v754_v59 = vld [vmem:[#allocation2 + $0x148] sm:$0xff] }
  0x45   :  { %1502 = vmatpush3.bf16.msra.mxu1 %v1993_v35  ;;  %vm2057_vm10 = vmor %vm69_vm8, %vm72_vm9 }
  0x46   :  { %1481 = vmatpush3.bf16.msra.mxu0 %v1947_v16  ;;  %1503 = vmatprep.subr.bf16.mxu1 %v1850_v0  ;;  %vm2129_vm12 = vmor %vm64_vm11, %vm2025_vm3 }
  0x47   :  { %1482 = vmatprep.subr.bf16.mxu0 %v1850_v0 }
  0x49   :  { %1505 = vmatpush3.bf16.msra.mxu1 %v1997_v38 }
  0x4a   :  { %1484 = vmatpush3.bf16.msra.mxu0 %v1951_v19  ;;  %1506 = vmatprep.subr.bf16.mxu1 %v1850_v0 }
  0x4b   :  { %1485 = vmatprep.subr.bf16.mxu0 %v1850_v0 }
  0x4d   :  { %1508 = vmatpush3.bf16.msra.mxu1 %v2001_v41 }
  0x4e   :  { %1487 = vmatpush3.bf16.msra.mxu0 %v1955_v22  ;;  %1509 = vmatprep.subr.bf16.mxu1 %v1850_v0 }
  0x4f   :  { %1488 = vmatprep.subr.bf16.mxu0 %v1850_v0 }
  0x51   :  { %1511 = vmatpush3.bf16.msra.mxu1 %v2005_v44 }
  0x52   :  { %1490 = vmatpush3.bf16.msra.mxu0 %v1959_v25  ;;  %1512 = vmatprep.subr.bf16.mxu1 %v1850_v0 }
  0x53   :  { %1491 = vmatprep.subr.bf16.mxu0 %v1850_v0 }
  0x55   :  { %1514 = vmatpush3.bf16.msra.mxu1 %v2008_v47 }
  0x56   :  { %1493 = vmatpush3.bf16.msra.mxu0 %v1963_v28  ;;  %1515 = vmatprep.subr.bf16.mxu1 %v1850_v0 }
  0x57   :  { %1518 = vmatprep.subr.bf16.mxu0 %v1850_v0 }
  0x59   :  { %1153 = vmatmul.mubr.f32.vlgmr.msra.gmra.mrb[0].mxu0 %v1967_v29  ;;  %1517 = vmatpush3.bf16.msra.mxu1 %v2012_v50 }
  0x5a   :  { %1520 = vmatpush3.bf16.msra.mxu0 %v1932_v5  ;;  %1222 = vmatprep.mubr.msk.f32.mxu0 %vm1851_vm0, %v1852_v1 }
  0x5b   :  { %1521 = vmatprep.subr.bf16.mxu0 %v1850_v0  ;;  %1542 = vmatprep.subr.bf16.mxu1 %v1850_v0 }
  0x5e   :  { %1523 = vmatpush3.bf16.msra.mxu0 %v1935_v7 }
  0x5f   :  { %1524 = vmatprep.subr.bf16.mxu0 %v1850_v0 }
  0x62   :  { %1526 = vmatpush3.bf16.msra.mxu0 %v1939_v12 }
  0x63   :  { %1527 = vmatprep.subr.bf16.mxu0 %v1850_v0 }
  0x66   :  { %1529 = vmatpush3.bf16.msra.mxu0 %v1947_v16 }
  0x67   :  { %1530 = vmatprep.subr.bf16.mxu0 %v1850_v0 }
  0x6a   :  { %1532 = vmatpush3.bf16.msra.mxu0 %v1951_v19 }
  0x6b   :  { %1533 = vmatprep.subr.bf16.mxu0 %v1850_v0 }
  0x6e   :  { %1535 = vmatpush3.bf16.msra.mxu0 %v1955_v22 }
  0x6f   :  { %1536 = vmatprep.subr.bf16.mxu0 %v1850_v0 }
  0x72   :  { %1538 = vmatpush3.bf16.msra.mxu0 %v1959_v25 }
  0x73   :  { %1539 = vmatprep.subr.bf16.mxu0 %v1850_v0 }
  0x76   :  { %1541 = vmatpush3.bf16.msra.mxu0 %v1963_v28 }
  0x77   :  { %1566 = vmatprep.subr.bf16.mxu0 %v1850_v0 }
 0x12c   :  { %v163_v52 = vpop.f32.mrb[0].mxu0 }
 0x12d   :  { %v164_v53 = vadd.f32 %v163_v52, %v2017_v51  ;;  %v1154_v54 = vpop.f32.mrb[1].mxu0  ;;  %v750_v52 = vld [vmem:[#allocation2 + $0x128] sm:$0xff] }
 0x12e   :  { %v751_v54 = vld [vmem:[#allocation2 + $0x130] sm:$0xff] }
 0x12f   :  { %v938_v55 = vmul.f32 -1.442695, %v164_v53 }
 0x131   :  { %1719 = vpow2.f32 %v938_v55  ;;  %v752_v55 = vld [vmem:[#allocation2 + $0x138] sm:$0xff] }
 0x13b   :  { %v1720_v56 = vpop.eup %1719 }
 0x13c   :  { %v170_v58 = vadd.f32 1.0, %v1720_v56  ;;  %v1672_v56 = vpack.c.bf16 %v752_v55, %v751_v54 }
 0x13e   :  { %1721 = vrcp.f32 %v170_v58  ;;  %v753_v58 = vld [vmem:[#allocation2 + $0x140] sm:$0xff] }
 0x148   :  { %v1722_v61 = vpop.eup %1721 }
 0x149   :  { %v173_v62 = vsel %vm2025_vm3, %v1722_v61, %v1967_v29  ;;  %v1675_v61 = vpack.c.bf16 %v754_v59, %v753_v58 }
 0x14a   :  { %1188 = vmatmul.mubr.f32.vlgmr.msra.gmra.mrb[0].mxu1 %v173_v62 }
 0x14b   :  { %1544 = vmatpush3.bf16.msra.mxu1 %v1941_v13  ;;  %1257 = vmatprep.mubr.msk.f32.mxu1 %vm1851_vm0, %v1852_v1 }
 0x14c   :  { %1545 = vmatprep.subr.bf16.mxu1 %v1850_v0 }
 0x14f   :  { %1547 = vmatpush3.bf16.msra.mxu1 %v1989_v32 }
 0x150   :  { %1548 = vmatprep.subr.bf16.mxu1 %v1850_v0 }
 0x153   :  { %1550 = vmatpush3.bf16.msra.mxu1 %v1993_v35 }
 0x154   :  { %1551 = vmatprep.subr.bf16.mxu1 %v1850_v0 }
 0x157   :  { %1553 = vmatpush3.bf16.msra.mxu1 %v1997_v38 }
 0x158   :  { %1554 = vmatprep.subr.bf16.mxu1 %v1850_v0 }
 0x15b   :  { %1556 = vmatpush3.bf16.msra.mxu1 %v2001_v41 }
 0x15c   :  { %1557 = vmatprep.subr.bf16.mxu1 %v1850_v0 }
 0x15f   :  { %1559 = vmatpush3.bf16.msra.mxu1 %v2005_v44 }
 0x160   :  { %1560 = vmatprep.subr.bf16.mxu1 %v1850_v0 }
 0x163   :  { %1562 = vmatpush3.bf16.msra.mxu1 %v2008_v47 }
 0x164   :  { %1563 = vmatprep.subr.bf16.mxu1 %v1850_v0 }
 0x167   :  { %1565 = vmatpush3.bf16.msra.mxu1 %v2012_v50 }
 0x168   :  { %1590 = vmatprep.subr.bf16.mxu1 %v1850_v0 }
 0x21d   :  { %v256_v2 = vpop.f32.mrb[0].mxu1 }
 0x21e   :  { %v257_v3 = vadd.f32 %v256_v2, %v2050_v63  ;;  %v1189_v4 = vpop.f32.mrb[1].mxu1  ;;  %v755_v2 = vld [vmem:[#allocation2 + $0x150] sm:$0xff] }
 0x220   :  { %v939_v6 = vmul.f32 -1.442695, %v257_v3  ;;  %v756_v3 = vld [vmem:[#allocation2 + $0x158] sm:$0xff] }
 0x221   :  { %v1678_v4 = vpack.c.bf16 %v756_v3, %v755_v2 }
 0x222   :  { %1723 = vpow2.f32 %v939_v6  ;;  %v757_v6 = vld [vmem:[#allocation2 + $0x160] sm:$0xff] }
 0x22c   :  { %v1724_v8 = vpop.eup %1723 }
 0x22d   :  { %v263_v9 = vadd.f32 1.0, %v1724_v8  ;;  %v758_v8 = vld [vmem:[#allocation2 + $0x168] sm:$0xff] }
 0x22f   :  { %1725 = vrcp.f32 %v263_v9  ;;  %v1681_v9 = vpack.c.bf16 %v758_v8, %v757_v6 }
 0x239   :  { %v1726_v11 = vpop.eup %1725 }
 0x23a   :  { %v266_v14 = vsel %vm2057_vm10, %v1726_v11, %v173_v62  ;;  %v759_v11 = vld [vmem:[#allocation2 + $0x170] sm:$0xff] }
 0x23b   :  { %1223 = vmatmul.mubr.f32.vlgmr.msra.gmra.mrb[2].mxu0 %v266_v14 }
 0x23c   :  { %1568 = vmatpush3.bf16.msra.mxu0 %v1932_v5  ;;  %1292 = vmatprep.mubr.msk.f32.mxu0 %vm1851_vm0, %v1852_v1 }
 0x23d   :  { %1569 = vmatprep.subr.bf16.mxu0 %v1850_v0 }
 0x240   :  { %1571 = vmatpush3.bf16.msra.mxu0 %v1935_v7 }
 0x241   :  { %1572 = vmatprep.subr.bf16.mxu0 %v1850_v0 }
 0x244   :  { %1574 = vmatpush3.bf16.msra.mxu0 %v1939_v12 }
 0x245   :  { %1575 = vmatprep.subr.bf16.mxu0 %v1850_v0 }
 0x248   :  { %1577 = vmatpush3.bf16.msra.mxu0 %v1947_v16 }
 0x249   :  { %1578 = vmatprep.subr.bf16.mxu0 %v1850_v0 }
 0x24c   :  { %1580 = vmatpush3.bf16.msra.mxu0 %v1951_v19 }
 0x24d   :  { %1581 = vmatprep.subr.bf16.mxu0 %v1850_v0 }
 0x250   :  { %1583 = vmatpush3.bf16.msra.mxu0 %v1955_v22 }
 0x251   :  { %1584 = vmatprep.subr.bf16.mxu0 %v1850_v0 }
 0x254   :  { %1586 = vmatpush3.bf16.msra.mxu0 %v1959_v25 }
 0x255   :  { %1587 = vmatprep.subr.bf16.mxu0 %v1850_v0 }
 0x258   :  { %1589 = vmatpush3.bf16.msra.mxu0 %v1963_v28 }
 0x259   :  { %1614 = vmatprep.subr.bf16.mxu0 %v1850_v0 }
 0x25b   :  { %1293 = vmatmul.mubr.f32.vlgmr.msra.gmra.mrb[4].mxu0 %v2080_v15 }
 0x25c   :  { %1616 = vmatpush3.bf16.msra.mxu0 %v1932_v5  ;;  %1362 = vmatprep.mubr.msk.f32.mxu0 %vm1851_vm0, %v1852_v1 }
 0x25d   :  { %1617 = vmatprep.subr.bf16.mxu0 %v1850_v0 }
 0x260   :  { %1619 = vmatpush3.bf16.msra.mxu0 %v1935_v7 }
 0x261   :  { %1620 = vmatprep.subr.bf16.mxu0 %v1850_v0 }
 0x264   :  { %1622 = vmatpush3.bf16.msra.mxu0 %v1939_v12 }
 0x265   :  { %1623 = vmatprep.subr.bf16.mxu0 %v1850_v0 }
 0x268   :  { %1625 = vmatpush3.bf16.msra.mxu0 %v1947_v16 }
 0x269   :  { %1626 = vmatprep.subr.bf16.mxu0 %v1850_v0 }
 0x26c   :  { %1628 = vmatpush3.bf16.msra.mxu0 %v1951_v19 }
 0x26d   :  { %1629 = vmatprep.subr.bf16.mxu0 %v1850_v0 }
 0x270   :  { %1631 = vmatpush3.bf16.msra.mxu0 %v1955_v22 }
 0x271   :  { %1632 = vmatprep.subr.bf16.mxu0 %v1850_v0 }
 0x274   :  { %1634 = vmatpush3.bf16.msra.mxu0 %v1959_v25 }
 0x275   :  { %1635 = vmatprep.subr.bf16.mxu0 %v1850_v0 }
 0x278   :  { %1637 = vmatpush3.bf16.msra.mxu0 %v1963_v28 }
 0x279   :  { %1662 = vmatprep.subr.bf16.mxu0 %v1850_v0 }
 0x30e   :  { %v333_v5 = vpop.f32.mrb[2].mxu0 }
 0x30f   :  { %v334_v7 = vadd.f32 %v333_v5, %v2017_v51  ;;  %v1224_v12 = vpop.f32.mrb[3].mxu0 }
 0x311   :  { %v940_v16 = vmul.f32 -1.442695, %v334_v7 }
 0x313   :  { %1727 = vpow2.f32 %v940_v16 }
 0x31d   :  { %v1728_v17 = vpop.eup %1727 }
 0x31e   :  { %v340_v18 = vadd.f32 1.0, %v1728_v17 }
 0x320   :  { %1729 = vrcp.f32 %v340_v18 }
 0x32a   :  { %v1730_v19 = vpop.eup %1729 }
 0x32b   :  { %v2105_v20 = vsel %vm2025_vm3, %v1730_v19, %v266_v14  ;;  %v760_v14 = vld [vmem:[#allocation2 + $0x178] sm:$0xff] }
 0x32c   :  { %1258 = vmatmul.mubr.f32.vlgmr.msra.gmra.mrb[2].mxu1 %v2105_v20 }
 0x32d   :  { %1592 = vmatpush3.bf16.msra.mxu1 %v1941_v13  ;;  %1327 = vmatprep.mubr.msk.f32.mxu1 %vm1851_vm0, %v1852_v1 }
 0x32e   :  { %v489_v21 = vpop.f32.mrb[4].mxu0  ;;  %1593 = vmatprep.subr.bf16.mxu1 %v1850_v0 }
 0x32f   :  { %v490_v22 = vadd.f32 %v489_v21, %v2017_v51  ;;  %v1294_v23 = vpop.f32.mrb[5].mxu0 }
 0x331   :  { %v942_v24 = vmul.f32 -1.442695, %v490_v22  ;;  %1595 = vmatpush3.bf16.msra.mxu1 %v1989_v32  ;;  %v583_v22 = vld [vmem:[#allocation7 + $0x8] sm:$0xff] }
 0x332   :  { %1596 = vmatprep.subr.bf16.mxu1 %v1850_v0 }
 0x333   :  { %1731 = vpow2.f32 %v942_v24 }
 0x335   :  { %1598 = vmatpush3.bf16.msra.mxu1 %v1993_v35 }
 0x336   :  { %1599 = vmatprep.subr.bf16.mxu1 %v1850_v0 }
 0x339   :  { %1601 = vmatpush3.bf16.msra.mxu1 %v1997_v38 }
 0x33a   :  { %1602 = vmatprep.subr.bf16.mxu1 %v1850_v0 }
 0x33d   :  { %v1732_v25 = vpop.eup %1731  ;;  %1604 = vmatpush3.bf16.msra.mxu1 %v2001_v41 }
 0x33e   :  { %v496_v26 = vadd.f32 1.0, %v1732_v25  ;;  %1605 = vmatprep.subr.bf16.mxu1 %v1850_v0 }
 0x340   :  { %1733 = vrcp.f32 %v496_v26 }
 0x341   :  { %1607 = vmatpush3.bf16.msra.mxu1 %v2005_v44 }
 0x342   :  { %1608 = vmatprep.subr.bf16.mxu1 %v1850_v0 }
 0x345   :  { %1610 = vmatpush3.bf16.msra.mxu1 %v2008_v47 }
 0x346   :  { %1611 = vmatprep.subr.bf16.mxu1 %v1850_v0 }
 0x349   :  { %1613 = vmatpush3.bf16.msra.mxu1 %v2012_v50 }
 0x34a   :  { %v1734_v28 = vpop.eup %1733  ;;  %1638 = vmatprep.subr.bf16.mxu1 %v1850_v0 }
 0x34b   :  { %vm499_vm13 = vcmp.lt.f32.partialorder %v422_v27, %v1734_v28 }
 0x34c   :  { %v943_v30 = vsel %vm499_vm13, 1.0, %v1852_v1 }
 0x34d   :  { %v502_v31 = vsel %vm2129_vm12, %v943_v30, %v2080_v15  ;;  %v1684_v15 = vpack.c.bf16 %v760_v14, %v759_v11 }
 0x34e   :  { %1328 = vmatmul.mubr.f32.vlgmr.msra.gmra.mrb[4].mxu1 %v502_v31 }
 0x34f   :  { %1640 = vmatpush3.bf16.msra.mxu1 %v1941_v13  ;;  %1397 = vmatprep.mubr.msk.f32.mxu1 %vm1851_vm0, %v1852_v1 }
 0x350   :  { %1641 = vmatprep.subr.bf16.mxu1 %v1850_v0 }
 0x353   :  { %1643 = vmatpush3.bf16.msra.mxu1 %v1989_v32 }
 0x354   :  { %1644 = vmatprep.subr.bf16.mxu1 %v1850_v0 }
 0x357   :  { %1646 = vmatpush3.bf16.msra.mxu1 %v1993_v35 }
 0x358   :  { %1647 = vmatprep.subr.bf16.mxu1 %v1850_v0 }
 0x35b   :  { %1649 = vmatpush3.bf16.msra.mxu1 %v1997_v38 }
 0x35c   :  { %1650 = vmatprep.subr.bf16.mxu1 %v1850_v0 }
 0x35f   :  { %1652 = vmatpush3.bf16.msra.mxu1 %v2001_v41  ;;  %v746_v41 = vld [vmem:[#allocation2 + $0x108] sm:$0xff] }
 0x360   :  { %1653 = vmatprep.subr.bf16.mxu1 %v1850_v0 }
 0x363   :  { %1655 = vmatpush3.bf16.msra.mxu1 %v2005_v44  ;;  %v2158_v44 = vpack.c.bf16 %v746_v41, %v745_v40 }
 0x364   :  { %1656 = vmatprep.subr.bf16.mxu1 %v1850_v0 }
 0x367   :  { %1658 = vmatpush3.bf16.msra.mxu1 %v2008_v47  ;;  %v748_v47 = vld [vmem:[#allocation2 + $0x118] sm:$0xff] }
 0x368   :  { %1659 = vmatprep.subr.bf16.mxu1 %v1850_v0  ;;  %v1666_v49 = vpack.c.bf16 %v748_v47, %v747_v46 }
 0x36b   :  { %1661 = vmatpush3.bf16.msra.mxu1 %v2012_v50  ;;  %v749_v50 = vld [vmem:[#allocation2 + $0x120] sm:$0xff] }
 0x36c   :  { %1686 = vmatprep.subr.bf16.mxu1 %v1850_v0  ;;  %v1669_v53 = vpack.c.bf16 %v750_v52, %v749_v50 }
 0x3ff   :  { %v410_v13 = vpop.f32.mrb[2].mxu1 }
 0x400   :  { %v1259_v32 = vpop.f32.mrb[3].mxu1  ;;  %v411_v39 = vadd.f32 %v410_v13, %v2050_v63 }
 0x402   :  { %v941_v43 = vmul.f32 -1.442695, %v411_v39 }
 0x421   :  { %v569_v33 = vpop.f32.mrb[4].mxu1 }
 0x422   :  { %v570_v34 = vadd.f32 %v569_v33, %v2050_v63  ;;  %v1329_v35 = vpop.f32.mrb[5].mxu1 }
 0x424   :  { %v944_v36 = vmul.f32 -1.442695, %v570_v34  ;;  %v79_v34 = vld [vmem:[#allocation2 + $0x190] sm:$0xff] }
 0x426   :  { %1735 = vpow2.f32 %v944_v36 }
 0x430   :  { %v1736_v37 = vpop.eup %1735 }
 0x431   :  { %v576_v38 = vadd.f32 1.0, %v1736_v37 }
 0x433   :  { %1737 = vrcp.f32 %v576_v38 }
 0x434   :  { %1739 = vpow2.f32 %v941_v43 }
 0x43d   :  { %v1738_v42 = vpop.eup %1737 }
 0x43e   :  { %vm579_vm14 = vcmp.lt.f32.partialorder %v422_v27, %v1738_v42  ;;  %v1740_v60 = vpop.eup %1739 }
 0x43f   :  { %v945_v45 = vsel %vm579_vm14, 1.0, %v1852_v1  ;;  %v417_v62 = vadd.f32 1.0, %v1740_v60 }
 0x440   :  { %v582_v48 = vsel %vm2057_vm10, %v945_v45, %v502_v31 }
 0x441   :  { %1363 = vmatmul.mubr.f32.vlgmr.msra.gmra.mrb[6].mxu0 %v582_v48  ;;  %1741 = vrcp.f32 %v417_v62 }
 0x442   :  { %1664 = vmatpush3.bf16.msra.mxu0 %v2158_v44  ;;  %1432 = vmatprep.mubr.msk.f32.mxu0 %vm1851_vm0, %v1852_v1 }
 0x443   :  { %1665 = vmatprep.subr.bf16.mxu0 %v1850_v0 }
 0x446   :  { %1667 = vmatpush3.bf16.msra.mxu0 %v1666_v49 }
 0x447   :  { %1668 = vmatprep.subr.bf16.mxu0 %v1850_v0 }
 0x44a   :  { %1670 = vmatpush3.bf16.msra.mxu0 %v1669_v53 }
 0x44b   :  { %1671 = vmatprep.subr.bf16.mxu0 %v1850_v0  ;;  %v1742_v5 = vpop.eup %1741 }
 0x44c   :  { %v420_v7 = vsel %vm2057_vm10, %v1742_v5, %v2105_v20 }
 0x44d   :  { %v744_v36 = vmul.f32 %v420_v7, %v79_v34 }
 0x44e   :  { %1673 = vmatpush3.bf16.msra.mxu0 %v1672_v56 }
 0x44f   :  { %1674 = vmatprep.subr.bf16.mxu0 %v1850_v0 }
 0x452   :  { %1676 = vmatpush3.bf16.msra.mxu0 %v1675_v61 }
 0x453   :  { %1677 = vmatprep.subr.bf16.mxu0 %v1850_v0 }
 0x456   :  { %1679 = vmatpush3.bf16.msra.mxu0 %v1678_v4 }
 0x457   :  { %1680 = vmatprep.subr.bf16.mxu0 %v1850_v0 }
 0x45a   :  { %1682 = vmatpush3.bf16.msra.mxu0 %v1681_v9 }
 0x45b   :  { %1683 = vmatprep.subr.bf16.mxu0 %v1850_v0 }
 0x45e   :  { %1685 = vmatpush3.bf16.msra.mxu0 %v1684_v15 }
 0x461   :  { %1433 = vmatmul.mubr.f32.vlgmr.msra.gmra.mrb[8].mxu0 %v420_v7 }
 0x514   :  { %v650_v12 = vpop.f32.mrb[6].mxu0 }
 0x515   :  { %v651_v16 = vadd.f32 %v650_v12, %v2017_v51  ;;  %v1364_v17 = vpop.f32.mrb[7].mxu0 }
 0x517   :  { %v946_v18 = vmul.f32 -1.442695, %v651_v16 }
 0x519   :  { %1743 = vpow2.f32 %v946_v18 }
 0x523   :  { %v1744_v19 = vpop.eup %1743 }
 0x524   :  { %v657_v21 = vadd.f32 1.0, %v1744_v19 }
 0x526   :  { %1745 = vrcp.f32 %v657_v21 }
 0x530   :  { %v1746_v23 = vpop.eup %1745 }
 0x531   :  { %vm660_vm15 = vcmp.lt.f32.partialorder %v583_v22, %v1746_v23 }
 0x532   :  { %v947_v24 = vsel %vm660_vm15, 1.0, %v1852_v1 }
 0x533   :  { %v663_v25 = vsel %vm2129_vm12, %v947_v24, %v582_v48 }
 0x534   :  { %v827_v26 = vpop.f32.mrb[8].mxu0  ;;  %1398 = vmatmul.mubr.f32.vlgmr.msra.gmra.mrb[6].mxu1 %v663_v25 }
 0x535   :  { %v1434_v20 = vpop.f32.mrb[9].mxu0  ;;  %1688 = vmatpush3.bf16.msra.mxu1 %v2158_v44  ;;  %1467 = vmatprep.mubr.msk.f32.mxu1 %vm1851_vm0, %v1852_v1  ;;  %v831_v35 = vmul.f32 %v827_v26, %v420_v7 }
 0x536   :  { %1689 = vmatprep.subr.bf16.mxu1 %v1850_v0 }
 0x537   :  { %v832_v40 = vadd.f32 %v831_v35, %v744_v36 }
 0x539   :  { %1691 = vmatpush3.bf16.msra.mxu1 %v1666_v49 }
 0x53a   :  { %1692 = vmatprep.subr.bf16.mxu1 %v1850_v0 }
 0x53d   :  { %1694 = vmatpush3.bf16.msra.mxu1 %v1669_v53 }
 0x53e   :  { %1695 = vmatprep.subr.bf16.mxu1 %v1850_v0 }
 0x541   :  { %1697 = vmatpush3.bf16.msra.mxu1 %v1672_v56 }
 0x542   :  { %1698 = vmatprep.subr.bf16.mxu1 %v1850_v0 }
 0x545   :  { %1700 = vmatpush3.bf16.msra.mxu1 %v1675_v61 }
 0x546   :  { %1701 = vmatprep.subr.bf16.mxu1 %v1850_v0 }
 0x549   :  { %1703 = vmatpush3.bf16.msra.mxu1 %v1678_v4 }
 0x54a   :  { %1704 = vmatprep.subr.bf16.mxu1 %v1850_v0 }
 0x54d   :  { %1706 = vmatpush3.bf16.msra.mxu1 %v1681_v9 }
 0x54e   :  { %1707 = vmatprep.subr.bf16.mxu1 %v1850_v0  ;;  %v59_v0 = vshrl.u32 %v56_v57, 7 }
 0x550   :  { %vm74_vm1 = vcmp.lt.s32.totalorder %v59_v0, 4 }
 0x551   :  { %1709 = vmatpush3.bf16.msra.mxu1 %v1684_v15  ;;  %v937_v42 = vsel %vm74_vm1, 1.0, %v1852_v1 }
 0x607   :  { %v730_v51 = vpop.f32.mrb[6].mxu1 }
 0x608   :  { %v731_v27 = vadd.f32 %v730_v51, %v2050_v63  ;;  %v1399_v28 = vpop.f32.mrb[7].mxu1 }
 0x60a   :  { %v948_v29 = vmul.f32 -1.442695, %v731_v27 }
 0x60c   :  { %1747 = vpow2.f32 %v948_v29 }
 0x616   :  { %v1748_v30 = vpop.eup %1747 }
 0x617   :  { %v737_v31 = vadd.f32 1.0, %v1748_v30 }
 0x619   :  { %1749 = vrcp.f32 %v737_v31 }
 0x623   :  { %v1750_v13 = vpop.eup %1749 }
 0x624   :  { %vm740_vm0 = vcmp.lt.f32.partialorder %v583_v22, %v1750_v13 }
 0x625   :  { %v949_v32 = vsel %vm740_vm0, 1.0, %v1852_v1 }
 0x626   :  { %v743_v33 = vsel %vm2057_vm10, %v949_v32, %v663_v25 }
 0x627   :  { %1468 = vmatmul.mubr.f32.vlgmr.msra.gmra.mrb[8].mxu1 %v743_v33  ;;  %917 = vst [vmem:[#allocation8] sm:$0xff] %v743_v33  ;;  %v833_v37 = vmul.f32 %v743_v33, %v79_v34 }
 0x6fa   :  { %v900_v63 = vpop.f32.mrb[8].mxu1 }
 0x6fb   :  { %v904_v38 = vmul.f32 %v900_v63, %v743_v33  ;;  %v1469_v39 = vpop.f32.mrb[9].mxu1 }
 0x6fd   :  { %v905_v41 = vadd.f32 %v904_v38, %v833_v37 }
 0x6ff   :  { %v906_v43 = vsub.f32 %v832_v40, %v905_v41 }
 0x701   :  { %v907_v44 = vmul.f32 %v937_v42, %v906_v43 }
 0x703   :  { %v908_v10 = vrot.slane %v907_v44, 4 }
 0x705   :  { %v909_v45 = vadd.f32 %v908_v10, %v907_v44 }
 0x707   :  { %v910_v46 = vrot.slane %v909_v45, 2 }
 0x709   :  { %v911_v47 = vadd.f32 %v910_v46, %v909_v45 }
 0x70b   :  { %v912_v48 = vrot.slane %v911_v47, 1 }
 0x70d   :  { %v913_v57 = vadd.f32 %v912_v48, %v911_v47 }
 0x70f   :  { %914 = vadd.xlane.f32.xlu0 %v913_v57 }
 0x79c   :  { %v915_v49 = vpop.xlane.xlu0 %914 }
 0x79d   :  { %v916_v50 = vmul.f32 -0.25, %v915_v49 }
 0x79f   :  { %918 = vst [vmem:[#allocation8 + $0x8] sm:$0xff] %v916_v50 }
 0x7a0   :  { %1828 = shalt.err (!%p1825_p0)
}
 0x7a1   :  { %s1829_s27 = scalar_lea.hbm %s2214_s3, 256 }
 0x7a2   :  { %p1830_p1 = scmp.ne.s32.totalorder %s2214_s3, %s1829_s27  ;;  %p1833_p2 = scmp.lt.u32.totalorder %s1829_s27, %s2214_s3 }
 0x7a4   :  { %p1835_p3 = pnand %p1833_p2, %p1830_p1 }
 0x7a6   :  { %1838 = shalt.err (!%p1835_p3)
}
 0x7a7   :  { %930 = dma.vmem_to_hbm [thread:$0]  %s925_s21, 256, %s2214_s3, [#allocation4], %s1847_s24, %s1847_s24, %s1848_s25  }
 0x7a8   :  { %1843 = dma.done.wait [#allocation4], 256  }
 0x7a9   :  { %1844 = vsyncadd [#allocation4], 4294967040 }
 0x7aa   :  { %934 = vsyncpa [#allocation3], 1 }
 0x7ab   :  { %935 = vsyncpa [#allocation6], 1 }
 0x7ac   :  { %936 = vsyncpa [#allocation4], 1 }

</bundles_post_ra>
